<compile_context>
chip_gen: v5e
topology: v5e:2x2
jax: 0.10.0
libtpu: 0.0.40
codegen_flags: <defaults>
</compile_context>

<pallas_src>
import jax
import jax.numpy as jnp
from jax.experimental import pallas as pl
from jax.experimental.pallas import tpu as pltpu


def gcn_classifier_kernel(a_ref, xw1_ref, dis_ref, b1_ref, w2_ref, b2_ref,
                          out_ref, acc_ref):
    k = pl.program_id(1)

    @pl.when(k == 0)
    def _():
        acc_ref[...] = jnp.zeros_like(acc_ref)

    # Aggregate this K-slice of the neighbourhood:  A_tile @ (D^-1/2 X W1)
    # (MXU, bf16 inputs / f32 accumulation).
    acc_ref[...] += jnp.dot(a_ref[...], xw1_ref[...],
                            preferred_element_type=jnp.float32)

    @pl.when(k == pl.num_programs(1) - 1)
    def _():
        # Destination-side D^-1/2 row scale, encoder bias, ReLU   (VPU)
        h = jnp.maximum(acc_ref[...] * dis_ref[...] + b1_ref[...], 0.0)
        # Classifier linear + bias   (MXU)
        logits = jnp.dot(h.astype(w2_ref.dtype), w2_ref[...],
                         preferred_element_type=jnp.float32) + b2_ref[...]
        out_ref[...] = logits.astype(out_ref.dtype)


def model_forward(x, edge_index, w_enc, b_enc, w_cls, b_cls, *, tile=256):
    """x: [N, F] float32, edge_index: [2, E] int32. Returns logits [N, C] float32."""
    n, _ = x.shape
    hidden = w_enc.shape[1]
    num_classes = w_cls.shape[1]

    # Padded sizes: `tile` multiple for N (row & reduction tiles share it),
    # 128-lane multiples for hidden / classes (lane-dense stores).
    n_pad = pl.cdiv(n, tile) * tile
    h_pad = pl.cdiv(hidden, 128) * 128
    c_pad = pl.cdiv(num_classes, 128) * 128

    # ---------- plain-JAX glue (O(E) scatter + tiny O(N*H) matmul) ----------
    src, dst = edge_index[0], edge_index[1]
    # PyG GCNConv convention: messages flow source -> target, so row i of the
    # dense adjacency gathers features of the sources of edges pointing at i.
    a = jnp.zeros((n_pad, n_pad), dtype=jnp.float32).at[dst, src].add(1.0)
    eye = jnp.pad(jnp.eye(n, dtype=jnp.float32),
                  ((0, n_pad - n), (0, n_pad - n)))
    # Dedup parallel edges AND cap the diagonal at 1 even if self-loops existed.
    a_hat = jnp.minimum(a + eye, 1.0)

    deg = jnp.sum(a_hat, axis=1)
    d_inv_sqrt = jnp.where(deg > 0.0, jax.lax.rsqrt(jnp.maximum(deg, 1e-12)), 0.0)
    d_col = d_inv_sqrt[:, None].astype(jnp.float32)               # [n_pad, 1]

    # Hoisted encoder projection; fold source-side D^-1/2 in; bf16 streaming copy.
    xw1 = jnp.dot(x, w_enc)                                       # [n, hidden] f32
    xw1 = jnp.pad(xw1, ((0, n_pad - n), (0, h_pad - hidden)))
    xw1_scaled = (xw1 * d_col).astype(jnp.bfloat16)               # [n_pad, h_pad]

    a_bf16 = a_hat.astype(jnp.bfloat16)                           # 0/1: exact in bf16
    b1 = jnp.pad(b_enc, (0, h_pad - hidden)).reshape(1, h_pad).astype(jnp.float32)
    w2 = jnp.pad(w_cls, ((0, h_pad - hidden),
                         (0, c_pad - num_classes))).astype(jnp.bfloat16)
    b2 = jnp.pad(b_cls, (0, c_pad - num_classes)).reshape(1, c_pad).astype(jnp.float32)

    # ---------- Pallas hot path ----------
    grid = (n_pad // tile, n_pad // tile)
    cost = pl.CostEstimate(
        flops=2 * n_pad * n_pad * h_pad + 2 * n_pad * h_pad * c_pad,
        transcendentals=0,
        bytes_accessed=(a_bf16.size * 2
                        + (n_pad // tile) * n_pad * h_pad * 2   # xw1 re-streamed per row tile
                        + w2.size * 2
                        + n_pad * c_pad * 4
                        + (n_pad + h_pad + c_pad) * 4),
    )

    out = pl.pallas_call(
        gcn_classifier_kernel,
        out_shape=jax.ShapeDtypeStruct((n_pad, c_pad), jnp.float32),
        grid=grid,
        in_specs=[
            pl.BlockSpec((tile, tile), lambda i, k: (i, k)),    # A tile (streamed, bf16)
            pl.BlockSpec((tile, h_pad), lambda i, k: (k, 0)),   # D^-1/2 X W1 K-slice (bf16)
            pl.BlockSpec((tile, 1), lambda i, k: (i, 0)),       # d^-1/2 for this row tile
            pl.BlockSpec((1, h_pad), lambda i, k: (0, 0)),      # encoder bias
            pl.BlockSpec((h_pad, c_pad), lambda i, k: (0, 0)),  # classifier weight
            pl.BlockSpec((1, c_pad), lambda i, k: (0, 0)),      # classifier bias
        ],
        out_specs=pl.BlockSpec((tile, c_pad), lambda i, k: (i, 0)),
        scratch_shapes=[pltpu.VMEM((tile, h_pad), jnp.float32)],
        compiler_params=pltpu.CompilerParams(
            dimension_semantics=("parallel", "arbitrary"),
            vmem_limit_bytes=48 * 1024 * 1024,
        ),
        cost_estimate=cost,
    )(a_bf16, xw1_scaled, d_col, b1, w2, b2)

    return out[:n, :num_classes]


if __name__ == "__main__":
    N, F, H, C, E = 16, 32, 32, 8, 40

    key = jax.random.PRNGKey(0)
    k_x, k_e1, k_e2, k_w1, k_b1, k_w2, k_b2 = jax.random.split(key, 7)

    x = jax.random.normal(k_x, (N, F), dtype=jnp.float32)
    edge_index = jnp.stack(
        [
            jax.random.randint(k_e1, (E,), 0, N, dtype=jnp.int32),
            jax.random.randint(k_e2, (E,), 0, N, dtype=jnp.int32),
        ],
        axis=0,
    )

    # Deterministic parameter init (Glorot-ish scale).
    w_enc = jax.random.normal(k_w1, (F, H), dtype=jnp.float32) * (1.0 / jnp.sqrt(F))
    b_enc = jnp.zeros((H,), dtype=jnp.float32)
    w_cls = jax.random.normal(k_w2, (H, C), dtype=jnp.float32) * (1.0 / jnp.sqrt(H))
    b_cls = jnp.zeros((C,), dtype=jnp.float32)

    out = model_forward(x, edge_index, w_enc, b_enc, w_cls, b_cls)
    jax.block_until_ready(out)
    assert out.shape == (N, C)
    assert bool(jnp.all(jnp.isfinite(out)))
    print("KERNEL_OK")
</pallas_src>

<mosaic_0001>
module attributes {stable_mosaic.version = 11 : i64} {
  func.func @gcn_classifier_kernel(%arg0: i32, %arg1: i32, %arg2: memref<256x256xbf16, #tpu.memory_space<vmem>>, %arg3: memref<256x128xbf16, #tpu.memory_space<vmem>>, %arg4: memref<256x1xf32, #tpu.memory_space<vmem>>, %arg5: memref<1x128xf32, #tpu.memory_space<vmem>>, %arg6: memref<128x128xbf16, #tpu.memory_space<vmem>>, %arg7: memref<1x128xf32, #tpu.memory_space<vmem>>, %arg8: memref<256x128xf32, #tpu.memory_space<vmem>>, %arg9: memref<256x128xf32, #tpu.memory_space<vmem>>) attributes {dimension_semantics = [#tpu.dimension_semantics<parallel>, #tpu.dimension_semantics<arbitrary>], iteration_bounds = array<i64: 1, 1>, scalar_prefetch = 0 : i64, scratch_operands = 1 : i64, tpu.core_type = #tpu.core_type<tc>, window_params = [{transform_indices = @transform_0, window_bounds = array<i64: 256, 256>}, {transform_indices = @transform_1, window_bounds = array<i64: 256, 128>}, {transform_indices = @transform_2, window_bounds = array<i64: 256, 1>}, {pipeline_mode = #tpu.pipeline_mode<synchronous>, transform_indices = @transform_3, window_bounds = array<i64: 1, 128>}, {pipeline_mode = #tpu.pipeline_mode<synchronous>, transform_indices = @transform_4, window_bounds = array<i64: 128, 128>}, {pipeline_mode = #tpu.pipeline_mode<synchronous>, transform_indices = @transform_5, window_bounds = array<i64: 1, 128>}, {transform_indices = @transform_6, window_bounds = array<i64: 256, 128>}]} {
    %c0_i32 = arith.constant 0 : i32
    %0 = arith.cmpi eq, %arg1, %c0_i32 : i32
    %1 = arith.extui %0 : i1 to i32
    %c0_i32_0 = arith.constant 0 : i32
    %2 = arith.cmpi ne, %1, %c0_i32_0 : i32
    scf.if %2 {
      %cst_10 = arith.constant 0.000000e+00 : f32
      %12 = vector.broadcast %cst_10 : f32 to vector<256x128xf32>
      %c0_11 = arith.constant 0 : index
      %c0_12 = arith.constant 0 : index
      %13 = vector.load %arg9[%c0_11, %c0_12] : memref<256x128xf32, #tpu.memory_space<vmem>>, vector<256x128xf32>
      tpu.vector_store %arg9[%c0_11, %c0_12], %12 {strides = array<i32>} : memref<256x128xf32, #tpu.memory_space<vmem>>, vector<256x128xf32>,
    } else {
    }
    %c0 = arith.constant 0 : index
    %c0_1 = arith.constant 0 : index
    %3 = vector.load %arg9[%c0, %c0_1] : memref<256x128xf32, #tpu.memory_space<vmem>>, vector<256x128xf32>
    %c0_2 = arith.constant 0 : index
    %c0_3 = arith.constant 0 : index
    %4 = vector.load %arg2[%c0_2, %c0_3] : memref<256x256xbf16, #tpu.memory_space<vmem>>, vector<256x256xbf16>
    %c0_4 = arith.constant 0 : index
    %c0_5 = arith.constant 0 : index
    %5 = vector.load %arg3[%c0_4, %c0_5] : memref<256x128xbf16, #tpu.memory_space<vmem>>, vector<256x128xbf16>
    %cst = arith.constant dense<0.000000e+00> : vector<256x128xf32>
    %6 = tpu.matmul %4, %5, %cst {dimension_numbers = #tpu.dot_dimension_numbers<[1], [0], [0], [1], [0, 0, 1, 1], [], []>} : vector<256x256xbf16>, vector<256x128xbf16>, vector<256x128xf32> -> vector<256x128xf32>
    %7 = arith.addf %3, %6 : vector<256x128xf32>
    %c0_6 = arith.constant 0 : index
    %c0_7 = arith.constant 0 : index
    %8 = vector.load %arg9[%c0_6, %c0_7] : memref<256x128xf32, #tpu.memory_space<vmem>>, vector<256x128xf32>
    tpu.vector_store %arg9[%c0_6, %c0_7], %7 {strides = array<i32>} : memref<256x128xf32, #tpu.memory_space<vmem>>, vector<256x128xf32>,
    %c0_i32_8 = arith.constant 0 : i32
    %9 = arith.cmpi eq, %arg1, %c0_i32_8 : i32
    %10 = arith.extui %9 : i1 to i32
    %c0_i32_9 = arith.constant 0 : i32
    %11 = arith.cmpi ne, %10, %c0_i32_9 : i32
    scf.if %11 {
      %c0_10 = arith.constant 0 : index
      %c0_11 = arith.constant 0 : index
      %12 = vector.load %arg9[%c0_10, %c0_11] : memref<256x128xf32, #tpu.memory_space<vmem>>, vector<256x128xf32>
      %c0_12 = arith.constant 0 : index
      %c0_13 = arith.constant 0 : index
      %13 = vector.load %arg4[%c0_12, %c0_13] : memref<256x1xf32, #tpu.memory_space<vmem>>, vector<256x1xf32>
      %14 = vector.broadcast %13 : vector<256x1xf32> to vector<256x128xf32>
      %15 = arith.mulf %12, %14 : vector<256x128xf32>
      %c0_14 = arith.constant 0 : index
      %c0_15 = arith.constant 0 : index
      %16 = vector.load %arg5[%c0_14, %c0_15] : memref<1x128xf32, #tpu.memory_space<vmem>>, vector<1x128xf32>
      %17 = vector.broadcast %16 : vector<1x128xf32> to vector<256x128xf32>
      %18 = arith.addf %15, %17 : vector<256x128xf32>
      %cst_16 = arith.constant 0.000000e+00 : f32
      %19 = vector.broadcast %cst_16 : f32 to vector<256x128xf32>
      %20 = arith.maximumf %18, %19 : vector<256x128xf32>
      %21 = arith.truncf %20 : vector<256x128xf32> to vector<256x128xbf16>
      %c0_17 = arith.constant 0 : index
      %c0_18 = arith.constant 0 : index
      %22 = vector.load %arg6[%c0_17, %c0_18] : memref<128x128xbf16, #tpu.memory_space<vmem>>, vector<128x128xbf16>
      %cst_19 = arith.constant dense<0.000000e+00> : vector<256x128xf32>
      %23 = tpu.matmul %21, %22, %cst_19 {dimension_numbers = #tpu.dot_dimension_numbers<[1], [0], [0], [1], [0, 0, 1, 1], [], []>} : vector<256x128xbf16>, vector<128x128xbf16>, vector<256x128xf32> -> vector<256x128xf32>
      %c0_20 = arith.constant 0 : index
      %c0_21 = arith.constant 0 : index
      %24 = vector.load %arg7[%c0_20, %c0_21] : memref<1x128xf32, #tpu.memory_space<vmem>>, vector<1x128xf32>
      %25 = vector.broadcast %24 : vector<1x128xf32> to vector<256x128xf32>
      %26 = arith.addf %23, %25 : vector<256x128xf32>
      %c0_22 = arith.constant 0 : index
      %c0_23 = arith.constant 0 : index
      %27 = vector.load %arg8[%c0_22, %c0_23] : memref<256x128xf32, #tpu.memory_space<vmem>>, vector<256x128xf32>
      tpu.vector_store %arg8[%c0_22, %c0_23], %26 {strides = array<i32>} : memref<256x128xf32, #tpu.memory_space<vmem>>, vector<256x128xf32>,
    } else {
    }
    return
  }
  func.func @transform_0(%arg0: i32, %arg1: i32) -> (i32, i32) {
    %c0_i32 = arith.constant 0 : i32
    return %arg0, %arg1 : i32, i32
  }
  func.func @transform_1(%arg0: i32, %arg1: i32) -> (i32, i32) {
    %c0_i32 = arith.constant 0 : i32
    %c0_i32_0 = arith.constant 0 : i32
    return %arg1, %c0_i32 : i32, i32
  }
  func.func @transform_2(%arg0: i32, %arg1: i32) -> (i32, i32) {
    %c0_i32 = arith.constant 0 : i32
    %c0_i32_0 = arith.constant 0 : i32
    return %arg0, %c0_i32 : i32, i32
  }
  func.func @transform_3(%arg0: i32, %arg1: i32) -> (i32, i32) {
    %c0_i32 = arith.constant 0 : i32
    %c0_i32_0 = arith.constant 0 : i32
    %c0_i32_1 = arith.constant 0 : i32
    return %c0_i32, %c0_i32_0 : i32, i32
  }
  func.func @transform_4(%arg0: i32, %arg1: i32) -> (i32, i32) {
    %c0_i32 = arith.constant 0 : i32
    %c0_i32_0 = arith.constant 0 : i32
    %c0_i32_1 = arith.constant 0 : i32
    return %c0_i32, %c0_i32_0 : i32, i32
  }
  func.func @transform_5(%arg0: i32, %arg1: i32) -> (i32, i32) {
    %c0_i32 = arith.constant 0 : i32
    %c0_i32_0 = arith.constant 0 : i32
    %c0_i32_1 = arith.constant 0 : i32
    return %c0_i32, %c0_i32_0 : i32, i32
  }
  func.func @transform_6(%arg0: i32, %arg1: i32) -> (i32, i32) {
    %c0_i32 = arith.constant 0 : i32
    %c0_i32_0 = arith.constant 0 : i32
    return %arg0, %c0_i32 : i32, i32
  }
}

</mosaic_0001>

<bundles_post_ra>
// kernel: tpu_custom_call.1
= control target key start
LH: loop header
LB: loop body
LE: loop exit
PB: predicated region body
PF: predicated region fallthrough
CT: control target
= control target key end

     0   :  { %11 = vsyncpa [#allocation4], 0  ;;  %s2132_s0 = inlined_call_operand.vmem [shape: bf16[256,256], index: 0, kind: input, shape index: {}]   ;;  %s2133_s1 = inlined_call_operand.hbm [shape: bf16[256,128], index: 1, kind: input, shape index: {}]   ;;  %s2134_s2 = inlined_call_operand.vmem [shape: f32[256,1], index: 2, kind: input, shape index: {}]   ;;  %s2135_s3 = inlined_call_operand.vmem [shape: f32[1,128], index: 3, kind: input, shape index: {}]   ;;  %s2136_s4 = inlined_call_operand.hbm [shape: bf16[128,128], index: 4, kind: input, shape index: {}]   ;;  %s2137_s5 = inlined_call_operand.vmem [shape: f32[1,128], index: 5, kind: input, shape index: {}]   ;;  %s2138_s6 = inlined_call_operand.hbm [shape: f32[256,128], index: 6, kind: output, shape index: {}]  }
   0x1   :  { %12 = vsyncpa [#allocation7], 0 }
   0x2   :  { %13 = vsyncpa [#allocation5], 0  ;;  %s20_s23 = sshll.u32 %s2133_s1, 4  ;;  %s1633_s24 = smov [#allocation3]   ;;  %s21_s23 = int_to_ptr.hbm [resolvable:$true] %s20_s23 }
   0x3   :  { %s22_s25 = sshll.u32 %s1633_s24, 4  ;;  %s37_s28 = sshll.u32 %s2136_s4, 4  ;;  %s23_s25 = int_to_ptr.vmem [resolvable:$true] %s22_s25  ;;  %s38_s28 = int_to_ptr.hbm [resolvable:$true] %s37_s28 }
   0x4   :  { %s1634_s29 = smov 64   ;;  %s1635_s30 = smov 4  }
   0x5   :  { %28 = dma.hbm_to_vmem [thread:$0]  %s21_s23, 2048, %s23_s25, [#allocation4], %s1634_s29, %s1634_s29, %s1635_s30  }
   0x6   :  { %s1636_s7 = smov [#allocation6]  }
   0x7   :  { %s39_s8 = sshll.u32 %s1636_s7, 4  ;;  %s40_s8 = int_to_ptr.vmem [resolvable:$true] %s39_s8 }
   0x8   :  { %45 = dma.hbm_to_vmem [thread:$0]  %s38_s28, 1024, %s40_s8, [#allocation7], %s1634_s29, %s1634_s29, %s1635_s30  }
   0x9   :  { %1627 = dma.done.wait [#allocation4], 2048  }
   0xa   :  { %1628 = vsyncadd [#allocation4], 4294965248 }
   0xb   :  { %1629 = dma.done.wait [#allocation7], 1024  }
   0xc   :  { %1630 = vsyncadd [#allocation7], 4294966272  ;;  %v1637_v0 = vmov 0   ;;  %v723_v1 = vld [vmem:[%s2134_s2 + $0x10] sm:$0xff]  ;;  %v721_v2 = vld [vmem:[%s2134_s2] sm:$0xff]  ;;  %s1224_s19 = sshll.u32 %s2138_s6, 4  ;;  %s1225_s19 = int_to_ptr.hbm [resolvable:$true] %s1224_s19 }
   0xd   :  { %1551 = vset.pattern.permute.xlu1 %v1637_v0  ;;  %1550 = vset.pattern.permute.xlu0 %v1637_v0  ;;  %v1501_v3 = vld [vmem:[#allocation3 + $0x38] sm:$0xff]  ;;  %v1500_v5 = vld [vmem:[#allocation3 + $0x30] sm:$0xff]  ;;  %v722_v8 = vld [vmem:[%s2134_s2 + $0x8] sm:$0xff]  ;;  %s1639_s20 = smov 128  }
   0xe   :  { %1552 = vset.pattern.permute.xlu2 %v1637_v0  ;;  %765 = vperm.xlu1 %1551, %v723_v1   ;;  %v1688_v4 = vld [vmem:[#allocation3 + $0x78] sm:$0xff]  ;;  %v1691_v6 = vld [vmem:[#allocation3 + $0x70] sm:$0xff]  ;;  %v1499_v9 = vld [vmem:[#allocation3 + $0x28] sm:$0xff] }
   0xf   :  { %755 = vperm.xlu0 %1550, %v721_v2   ;;  %444 = vmatpush.bf16.msra.mxu0 %v1501_v3  ;;  %v724_v7 = vld [vmem:[%s2134_s2 + $0x18] sm:$0xff]  ;;  %v1700_v10 = vld [vmem:[#allocation3 + $0x68] sm:$0xff]  ;;  %v725_v11 = vld [vmem:[%s2134_s2 + $0x20] sm:$0xff] }
  0x10   :  { %1518 = vmatpush.bf16.msra.mxu3 %v1501_v3  ;;  %533 = vmatpush.bf16.msra.mxu1 %v1688_v4  ;;  %v1498_v12 = vld [vmem:[#allocation3 + $0x20] sm:$0xff]  ;;  %v726_v14 = vld [vmem:[%s2134_s2 + $0x28] sm:$0xff]  ;;  %v728_v15 = vld [vmem:[%s2134_s2 + $0x38] sm:$0xff] }
  0x11   :  { %775 = vperm.xlu2 %1552, %v725_v11   ;;  %v1706_v13 = vld [vmem:[#allocation3 + $0x60] sm:$0xff]  ;;  %v727_v16 = vld [vmem:[%s2134_s2 + $0x30] sm:$0xff]  ;;  %v1497_v17 = vld [vmem:[#allocation3 + $0x18] sm:$0xff] }
  0x12   :  { %v1718_v18 = vld [vmem:[#allocation3 + $0x58] sm:$0xff]  ;;  %v1496_v19 = vld [vmem:[#allocation3 + $0x10] sm:$0xff]  ;;  %v729_v21 = vld [vmem:[%s2134_s2 + $0x40] sm:$0xff] }
  0x13   :  { %445 = vmatpush.bf16.msra.mxu0 %v1500_v5  ;;  %v1721_v20 = vld [vmem:[#allocation3 + $0x50] sm:$0xff]  ;;  %v730_v23 = vld [vmem:[%s2134_s2 + $0x48] sm:$0xff]  ;;  %v1494_v26 = vld [vmem:[#allocation3] sm:$0xff] }
  0x14   :  { %1519 = vmatpush.bf16.msra.mxu3 %v1500_v5  ;;  %534 = vmatpush.bf16.msra.mxu1 %v1691_v6  ;;  %v731_v22 = vld [vmem:[%s2134_s2 + $0x50] sm:$0xff]  ;;  %v1495_v24 = vld [vmem:[#allocation3 + $0x8] sm:$0xff]  ;;  %v1733_v27 = vld [vmem:[#allocation3 + $0x40] sm:$0xff] }
  0x15   :  { %v1503_v25 = vld [vmem:[#allocation3 + $0x48] sm:$0xff]  ;;  %v1240_v28 = vld [vmem:[%s2132_s0] sm:$0xf]  ;;  %v1462_v32 = vld [vmem:[%s2132_s0 + $0x4] sm:$0xf] }
  0x16   :  { %770 = vperm.xlu1 %1551, %v724_v7   ;;  %v1463_v29 = vld [vmem:[%s2132_s0 + $0x4] sm:$0xf0]  ;;  %v1336_v30 = vld [vmem:[%s2132_s0 + $0xc0] sm:$0xf]  ;;  %v1242_v33 = vld [vmem:[%s2132_s0 + $0x8] sm:$0xf0] }
  0x17   :  { %760 = vperm.xlu0 %1550, %v722_v8   ;;  %446 = vmatpush.bf16.msra.mxu0 %v1499_v9  ;;  %v1487_v31 = vld [vmem:[%s2132_s0 + $0xc4] sm:$0xf0]  ;;  %v732_v34 = vld [vmem:[%s2134_s2 + $0x58] sm:$0xff]  ;;  %v733_v36 = vld [vmem:[%s2134_s2 + $0x60] sm:$0xff]  ;;  %v1241_v37 = vor.u32 %v1463_v29, %v1240_v28  ;;  %v1245_v39 = vor.u32 %v1462_v32, %v1242_v33 }
  0x18   :  { %1520 = vmatpush.bf16.msra.mxu3 %v1499_v9  ;;  %535 = vmatpush.bf16.msra.mxu1 %v1700_v10  ;;  %v734_v35 = vld [vmem:[%s2134_s2 + $0x68] sm:$0xff]  ;;  %v1337_v38 = vor.u32 %v1487_v31, %v1336_v30  ;;  %v735_v40 = vld [vmem:[%s2134_s2 + $0x70] sm:$0xff]  ;;  %v737_v41 = vld [vmem:[%s2134_s2 + $0x80] sm:$0xff] }
  0x19   :  { %780 = vperm.xlu2 %1552, %v726_v14   ;;  %v736_v42 = vld [vmem:[%s2134_s2 + $0x78] sm:$0xff]  ;;  %v1248_v43 = vld [vmem:[%s2132_s0 + $0x10] sm:$0xf]  ;;  %v1464_v47 = vld [vmem:[%s2132_s0 + $0x14] sm:$0xf] }
  0x1a   :  { %v1465_v44 = vld [vmem:[%s2132_s0 + $0x14] sm:$0xf0]  ;;  %v1344_v45 = vld [vmem:[%s2132_s0 + $0xd0] sm:$0xf]  ;;  %v1250_v48 = vld [vmem:[%s2132_s0 + $0x18] sm:$0xf0] }
  0x1b   :  { %447 = vmatpush.bf16.msra.mxu0 %v1498_v12  ;;  %v1489_v46 = vld [vmem:[%s2132_s0 + $0xd4] sm:$0xf0]  ;;  %v738_v49 = vld [vmem:[%s2134_s2 + $0x88] sm:$0xff]  ;;  %v745_v51 = vld [vmem:[%s2134_s2 + $0xc0] sm:$0xff]  ;;  %v1249_v52 = vor.u32 %v1465_v44, %v1248_v43  ;;  %v1253_v54 = vor.u32 %v1464_v47, %v1250_v48 }
  0x1c   :  { %1521 = vmatpush.bf16.msra.mxu3 %v1498_v12  ;;  %536 = vmatpush.bf16.msra.mxu1 %v1706_v13  ;;  %v746_v50 = vld [vmem:[%s2134_s2 + $0xc8] sm:$0xff]  ;;  %v1345_v53 = vor.u32 %v1489_v46, %v1344_v45  ;;  %v739_v55 = vld [vmem:[%s2134_s2 + $0x90] sm:$0xff]  ;;  %v740_v57 = vld [vmem:[%s2134_s2 + $0x98] sm:$0xff] }
  0x1d   :  { %v747_v56 = vld [vmem:[%s2134_s2 + $0xd0] sm:$0xff]  ;;  %v1256_v58 = vld [vmem:[%s2132_s0 + $0x20] sm:$0xf]  ;;  %v1467_v59 = vld [vmem:[%s2132_s0 + $0x24] sm:$0xf0] }
  0x1e   :  { %790 = vperm.xlu1 %1551, %v728_v15   ;;  %v1352_v60 = vld [vmem:[%s2132_s0 + $0xe0] sm:$0xf]  ;;  %v1491_v61 = vld [vmem:[%s2132_s0 + $0xe4] sm:$0xf0]  ;;  %v1466_v62 = vld [vmem:[%s2132_s0 + $0x24] sm:$0xf]  ;;  %v1257_v3 = vor.u32 %v1467_v59, %v1256_v58 }
  0x1f   :  { %785 = vperm.xlu0 %1550, %v727_v16   ;;  %448 = vmatpush.bf16.msra.mxu0 %v1497_v17  ;;  %v1258_v63 = vld [vmem:[%s2132_s0 + $0x28] sm:$0xf0]  ;;  %v748_v0 = vld [vmem:[%s2134_s2 + $0xd8] sm:$0xff]  ;;  %v741_v2 = vld [vmem:[%s2134_s2 + $0xa0] sm:$0xff] }
  0x20   :  { %1522 = vmatpush.bf16.msra.mxu3 %v1497_v17  ;;  %537 = vmatpush.bf16.msra.mxu1 %v1718_v18  ;;  %v742_v1 = vld [vmem:[%s2134_s2 + $0xa8] sm:$0xff]  ;;  %v1261_v5 = vor.u32 %v1466_v62, %v1258_v63  ;;  %v743_v7 = vld [vmem:[%s2134_s2 + $0xb0] sm:$0xff]  ;;  %v1493_v12 = vld [vmem:[%s2132_s0 + $0xf4] sm:$0xf0] }
  0x21   :  { %795 = vperm.xlu2 %1552, %v729_v21   ;;  %v750_v8 = vld [vmem:[%s2134_s2 + $0xe8] sm:$0xff]  ;;  %v1264_v9 = vld [vmem:[%s2132_s0 + $0x30] sm:$0xf]  ;;  %v1266_v14 = vld [vmem:[%s2132_s0 + $0x38] sm:$0xf0] }
  0x22   :  { %v1360_v11 = vld [vmem:[%s2132_s0 + $0xf0] sm:$0xf]  ;;  %v744_v15 = vld [vmem:[%s2134_s2 + $0xb8] sm:$0xff]  ;;  %v1272_v21 = vld [vmem:[%s2132_s0 + $0x40] sm:$0xf] }
  0x23   :  { %449 = vmatpush.bf16.msra.mxu0 %v1496_v19  ;;  %v752_v16 = vld [vmem:[%s2134_s2 + $0xf8] sm:$0xff]  ;;  %v751_v17 = vld [vmem:[%s2134_s2 + $0xf0] sm:$0xff]  ;;  %v1475_v43 = vld [vmem:[%s2132_s0 + $0x64] sm:$0xf0] }
  0x24   :  { %1523 = vmatpush.bf16.msra.mxu3 %v1496_v19  ;;  %538 = vmatpush.bf16.msra.mxu1 %v1721_v20  ;;  %v1361_v19 = vor.u32 %v1493_v12, %v1360_v11  ;;  %v1280_v30 = vld [vmem:[%s2132_s0 + $0x50] sm:$0xf]  ;;  %v1473_v31 = vld [vmem:[%s2132_s0 + $0x54] sm:$0xf0]  ;;  %v1488_v32 = vld [vmem:[%s2132_s0 + $0xd4] sm:$0xf] }
  0x25   :  { %v1346_v33 = vld [vmem:[%s2132_s0 + $0xd8] sm:$0xf0]  ;;  %v1490_v44 = vld [vmem:[%s2132_s0 + $0xe4] sm:$0xf]  ;;  %v1354_v45 = vld [vmem:[%s2132_s0 + $0xe8] sm:$0xf0] }
  0x26   :  { %805 = vperm.xlu1 %1551, %v731_v22   ;;  %v1471_v22 = vld [vmem:[%s2132_s0 + $0x44] sm:$0xf0]  ;;  %v1474_v46 = vld [vmem:[%s2132_s0 + $0x64] sm:$0xf]  ;;  %v1290_v47 = vld [vmem:[%s2132_s0 + $0x68] sm:$0xf0] }
  0x27   :  { %800 = vperm.xlu0 %1550, %v730_v23   ;;  %450 = vmatpush.bf16.msra.mxu0 %v1495_v24  ;;  %v1486_v23 = vld [vmem:[%s2132_s0 + $0xc4] sm:$0xf]  ;;  %v1362_v58 = vld [vmem:[%s2132_s0 + $0xf8] sm:$0xf0]  ;;  %v1476_v59 = vld [vmem:[%s2132_s0 + $0x74] sm:$0xf] }
  0x28   :  { %1524 = vmatpush.bf16.msra.mxu3 %v1495_v24  ;;  %539 = vmatpush.bf16.msra.mxu1 %v1503_v25  ;;  %v1338_v24 = vld [vmem:[%s2132_s0 + $0xc8] sm:$0xf0]  ;;  %v1510_v63 = vld [vmem:[#allocation6] sm:$0xff] }
  0x29   :  { %810 = vperm.xlu2 %1552, %v732_v34   ;;  %v1341_v28 = vor.u32 %v1486_v23, %v1338_v24  ;;  %v1472_v34 = vld [vmem:[%s2132_s0 + $0x54] sm:$0xf]  ;;  %v1314_v23 = vld [vmem:[%s2132_s0 + $0x98] sm:$0xf0] }
  0x2b   :  { %451 = vmatpush.bf16.msra.mxu0 %v1494_v26 }
  0x2c   :  { %1525 = vmatpush.bf16.msra.mxu3 %v1494_v26  ;;  %540 = vmatpush.bf16.msra.mxu1 %v1733_v27  ;;  %v1274_v26 = vld [vmem:[%s2132_s0 + $0x48] sm:$0xf0] }
  0x2e   :  { %820 = vperm.xlu1 %1551, %v734_v35   ;;  %452 = vmatmul.bf16.vlgmr.msra.gmra.mxu0 %v1241_v37  ;;  %v1282_v35 = vld [vmem:[%s2132_s0 + $0x58] sm:$0xf0]  ;;  %v1349_v37 = vor.u32 %v1488_v32, %v1346_v33 }
  0x2f   :  { %815 = vperm.xlu0 %1550, %v733_v36   ;;  %512 = vmatmul.bf16.vlgmr.msra.gmra.mxu3 %v1337_v38  ;;  %v1281_v36 = vor.u32 %v1473_v31, %v1280_v30  ;;  %v1285_v38 = vor.u32 %v1472_v34, %v1282_v35 }
  0x30   :  { %1526 = vmatpush.bf16.msrb.mxu3 %v1688_v4  ;;  %541 = vmatmul.bf16.vlgmr.msra.gmra.mxu1 %v1245_v39  ;;  %v1353_v4 = vor.u32 %v1491_v61, %v1352_v60  ;;  %v1517_v39 = vld [vmem:[#allocation6 + $0x38] sm:$0xff] }
  0x31   :  { %825 = vperm.xlu2 %1552, %v735_v40   ;;  %1097 = vmatpush.bf16.msra.mxu2 %v1517_v39  ;;  %v1516_v40 = vld [vmem:[#allocation6 + $0x30] sm:$0xff]  ;;  %v1298_v60 = vld [vmem:[%s2132_s0 + $0x78] sm:$0xf0] }
  0x34   :  { %1527 = vmatpush.bf16.msrb.mxu3 %v1691_v6  ;;  %v749_v6 = vld [vmem:[%s2134_s2 + $0xe0] sm:$0xff]  ;;  %s1640_s2 = smov 8  }
  0x35   :  { %1098 = vmatpush.bf16.msra.mxu2 %v1516_v40 }
  0x36   :  { %835 = vperm.xlu1 %1551, %v737_v41   ;;  %v1515_v41 = vld [vmem:[#allocation6 + $0x28] sm:$0xff] }
  0x37   :  { %830 = vperm.xlu0 %1550, %v736_v42   ;;  %v1288_v42 = vld [vmem:[%s2132_s0 + $0x60] sm:$0xf] }
  0x38   :  { %1528 = vmatpush.bf16.msrb.mxu3 %v1700_v10  ;;  %v1469_v10 = vld [vmem:[%s2132_s0 + $0x34] sm:$0xf0]  ;;  %v1289_v48 = vor.u32 %v1475_v43, %v1288_v42  ;;  %v1320_v43 = vld [vmem:[%s2132_s0 + $0xa0] sm:$0xf] }
  0x39   :  { %840 = vperm.xlu2 %1552, %v738_v49   ;;  %1099 = vmatpush.bf16.msra.mxu2 %v1515_v41  ;;  %v1357_v49 = vor.u32 %v1490_v44, %v1354_v45  ;;  %v1483_v44 = vld [vmem:[%s2132_s0 + $0xa4] sm:$0xf0] }
  0x3c   :  { %1529 = vmatpush.bf16.msrb.mxu3 %v1706_v13  ;;  %v1468_v13 = vld [vmem:[%s2132_s0 + $0x34] sm:$0xf] }
  0x3e   :  { %880 = vperm.xlu1 %1551, %v746_v50   ;;  %457 = vmatmul.bf16.gmra.mxu0 %v1249_v52  ;;  %v1514_v50 = vld [vmem:[#allocation6 + $0x20] sm:$0xff]  ;;  %v1513_v52 = vld [vmem:[#allocation6 + $0x18] sm:$0xff] }
  0x3f   :  { %875 = vperm.xlu0 %1550, %v745_v51   ;;  %517 = vmatmul.bf16.gmra.mxu3 %v1345_v53  ;;  %v1293_v51 = vor.u32 %v1474_v46, %v1290_v47  ;;  %v1512_v53 = vld [vmem:[#allocation6 + $0x10] sm:$0xff]  ;;  %v1482_v46 = vld [vmem:[%s2132_s0 + $0xa4] sm:$0xf]  ;;  %v1322_v47 = vld [vmem:[%s2132_s0 + $0xa8] sm:$0xf0] }
  0x40   :  { %1530 = vmatpush.bf16.msrb.mxu3 %v1718_v18  ;;  %546 = vmatmul.bf16.gmra.mxu1 %v1253_v54  ;;  %v1265_v18 = vor.u32 %v1469_v10, %v1264_v9  ;;  %v1296_v54 = vld [vmem:[%s2132_s0 + $0x70] sm:$0xf] }
  0x41   :  { %845 = vperm.xlu2 %1552, %v739_v55   ;;  %1100 = vmatpush.bf16.msra.mxu2 %v1514_v50  ;;  %v1511_v55 = vld [vmem:[#allocation6 + $0x8] sm:$0xff] }
  0x44   :  { %1531 = vmatpush.bf16.msrb.mxu3 %v1721_v20  ;;  %v1269_v20 = vor.u32 %v1468_v13, %v1266_v14  ;;  %v1967_v14 = vld [vmem:[%s2135_s3] ss:$0 sm:$0xff] }
  0x45   :  { %1101 = vmatpush.bf16.msra.mxu2 %v1513_v52 }
  0x46   :  { %885 = vperm.xlu1 %1551, %v747_v56   ;;  %v1477_v56 = vld [vmem:[%s2132_s0 + $0x74] sm:$0xf0] }
  0x47   :  { %850 = vperm.xlu0 %1550, %v740_v57   ;;  %v1492_v57 = vld [vmem:[%s2132_s0 + $0xf4] sm:$0xf]  ;;  %v1297_v61 = vor.u32 %v1477_v56, %v1296_v54 }
  0x48   :  { %1532 = vmatpush.bf16.msrb.mxu3 %v1503_v25  ;;  %v1470_v25 = vld [vmem:[%s2132_s0 + $0x44] sm:$0xf]  ;;  %v1365_v62 = vor.u32 %v1492_v57, %v1362_v58 }
  0x49   :  { %890 = vperm.xlu2 %1552, %v748_v0   ;;  %v1277_v29 = vor.u32 %v1470_v25, %v1274_v26  ;;  %1102 = vmatpush.bf16.msra.mxu2 %v1512_v53  ;;  %v1301_v0 = vor.u32 %v1476_v59, %v1298_v60 }
  0x4c   :  { %1533 = vmatpush.bf16.msrb.mxu3 %v1733_v27  ;;  %v1273_v27 = vor.u32 %v1471_v22, %v1272_v21  ;;  %v1480_v22 = vld [vmem:[%s2132_s0 + $0x94] sm:$0xf] }
  0x4d   :  { %1103 = vmatpush.bf16.msra.mxu2 %v1511_v55 }
  0x4e   :  { %860 = vperm.xlu1 %1551, %v742_v1   ;;  %462 = vmatmul.bf16.gmra.mxu0 %v1257_v3  ;;  %v1304_v1 = vld [vmem:[%s2132_s0 + $0x80] sm:$0xf]  ;;  %v1478_v3 = vld [vmem:[%s2132_s0 + $0x84] sm:$0xf] }
  0x4f   :  { %855 = vperm.xlu0 %1550, %v741_v2   ;;  %522 = vmatmul.bf16.gmra.mxu3 %v1353_v4  ;;  %v1479_v2 = vld [vmem:[%s2132_s0 + $0x84] sm:$0xf0]  ;;  %v1306_v4 = vld [vmem:[%s2132_s0 + $0x88] sm:$0xf0] }
  0x50   :  { %551 = vmatmul.bf16.gmra.mxu1 %v1261_v5  ;;  %1534 = vmatpush.bf16.msra.mxu3 %v1517_v39  ;;  %v1305_v5 = vor.u32 %v1479_v2, %v1304_v1 }
  0x51   :  { %895 = vperm.xlu2 %1552, %v749_v6   ;;  %1104 = vmatpush.bf16.msra.mxu2 %v1510_v63 }
  0x54   :  { %1535 = vmatpush.bf16.msra.mxu3 %v1516_v40 }
  0x56   :  { %865 = vperm.xlu1 %1551, %v743_v7   ;;  %v1309_v7 = vor.u32 %v1478_v3, %v1306_v4  ;;  %v1328_v3 = vld [vmem:[%s2132_s0 + $0xb0] sm:$0xf]  ;;  %v1485_v4 = vld [vmem:[%s2132_s0 + $0xb4] sm:$0xf0] }
  0x57   :  { %900 = vperm.xlu0 %1550, %v750_v8  }
  0x58   :  { %1536 = vmatpush.bf16.msra.mxu3 %v1515_v41 }
  0x59   :  { %870 = vperm.xlu2 %1552, %v744_v15  }
  0x5c   :  { %1537 = vmatpush.bf16.msra.mxu3 %v1514_v50  ;;  %v1321_v50 = vor.u32 %v1483_v44, %v1320_v43 }
  0x5e   :  { %910 = vperm.xlu1 %1551, %v752_v16   ;;  %467 = vmatmul.bf16.gmra.mxu0 %v1265_v18 }
  0x5f   :  { %905 = vperm.xlu0 %1550, %v751_v17   ;;  %527 = vmatmul.bf16.gmra.mxu3 %v1361_v19  ;;  %v1312_v19 = vld [vmem:[%s2132_s0 + $0x90] sm:$0xf] }
  0x60   :  { %556 = vmatmul.bf16.gmra.mxu1 %v1269_v20  ;;  %1538 = vmatpush.bf16.msra.mxu3 %v1513_v52  ;;  %v1481_v20 = vld [vmem:[%s2132_s0 + $0x94] sm:$0xf0]  ;;  %v1325_v52 = vor.u32 %v1482_v46, %v1322_v47 }
  0x61   :  { %v1313_v26 = vor.u32 %v1481_v20, %v1312_v19 }
  0x64   :  { %1539 = vmatpush.bf16.msra.mxu3 %v1512_v53 }
  0x68   :  { %1540 = vmatpush.bf16.msra.mxu3 %v1511_v55 }
  0x6c   :  { %1541 = vmatpush.bf16.msra.mxu3 %v1510_v63 }
  0x6e   :  { %472 = vmatmul.bf16.gmra.mxu0 %v1273_v27 }
  0x6f   :  { %601 = vmatmul.bf16.vlgmr.msrb.gmra.mxu3 %v1341_v28  ;;  %v1317_v28 = vor.u32 %v1480_v22, %v1314_v23 }
  0x70   :  { %561 = vmatmul.bf16.gmra.mxu1 %v1277_v29 }
  0x7e   :  { %477 = vmatmul.bf16.gmra.mxu0 %v1281_v36 }
  0x7f   :  { %606 = vmatmul.bf16.gmra.mxu3 %v1349_v37 }
  0x80   :  { %566 = vmatmul.bf16.gmra.mxu1 %v1285_v38  ;;  %v766_v31 = vpop.permute.xlu1 %765  ;;  %v776_v38 = vpop.permute.xlu2 %775 }
  0x81   :  { %v756_v8 = vpop.permute.xlu0 %755 }
  0x88   :  { %v771_v41 = vpop.permute.xlu1 %770  ;;  %v781_v57 = vpop.permute.xlu2 %780 }
  0x89   :  { %v761_v17 = vpop.permute.xlu0 %760 }
  0x8e   :  { %482 = vmatmul.bf16.gmra.mxu0 %v1289_v48 }
  0x8f   :  { %611 = vmatmul.bf16.gmra.mxu3 %v1357_v49 }
  0x90   :  { %571 = vmatmul.bf16.gmra.mxu1 %v1293_v51 }
  0x91   :  { %v786_v58 = vpop.permute.xlu0 %785 }
  0x9e   :  { %487 = vmatmul.bf16.gmra.mxu0 %v1297_v61  ;;  %v791_v61 = vpop.permute.xlu1 %790 }
  0x9f   :  { %616 = vmatmul.bf16.gmra.mxu3 %v1365_v62 }
  0xa0   :  { %576 = vmatmul.bf16.gmra.mxu1 %v1301_v0 }
  0xa6   :  { %v806_v20 = vpop.permute.xlu1 %805 }
  0xab   :  { %v453_v6 = vpop.f32.mrf.mxu0 }
  0xad   :  { %v542_v9 = vpop.f32.mrf.mxu1 }
  0xae   :  { %492 = vmatmul.bf16.gmra.mxu0 %v1305_v5  ;;  %v543_v10 = vadd.f32 %v542_v9, %v453_v6  ;;  %v796_v6 = vpop.permute.xlu2 %795  ;;  %v801_v9 = vpop.permute.xlu0 %800 }
  0xb0   :  { %581 = vmatmul.bf16.gmra.mxu1 %v1309_v7  ;;  %v913_v12 = vmul.f32 %v756_v8, %v543_v10  ;;  %v1484_v7 = vld [vmem:[%s2132_s0 + $0xb4] sm:$0xf]  ;;  %v1330_v8 = vld [vmem:[%s2132_s0 + $0xb8] sm:$0xf0] }
  0xb2   :  { %v1962_v11 = vpop.f32.mrf.mxu3  ;;  %v949_v21 = vadd.f32 %v1967_v14, %v913_v12 }
  0xb3   :  { %v455_v13 = vpop.f32.mrf.mxu0 }
  0xb4   :  { %v981_v29 = vmax.f32 %v949_v21, 0.0 }
  0xb5   :  { %v544_v15 = vpop.f32.mrf.mxu1 }
  0xb6   :  { %v545_v16 = vadd.f32 %v544_v15, %v455_v13  ;;  %v1329_v13 = vor.u32 %v1485_v4, %v1328_v3 }
  0xb8   :  { %v914_v18 = vmul.f32 %v761_v17, %v545_v16  ;;  %v1333_v16 = vor.u32 %v1484_v7, %v1330_v8 }
  0xba   :  { %v1982_v24 = vpop.f32.mrf.mxu3  ;;  %v950_v25 = vadd.f32 %v1967_v14, %v914_v18 }
  0xbb   :  { %v458_v27 = vpop.f32.mrf.mxu0 }
  0xbc   :  { %v982_v30 = vmax.f32 %v950_v25, 0.0  ;;  %v811_v25 = vpop.permute.xlu2 %810 }
  0xbd   :  { %v547_v32 = vpop.f32.mrf.mxu1 }
  0xbe   :  { %v1013_v33 = vpack.c.bf16 %v982_v30, %v981_v29  ;;  %497 = vmatmul.bf16.gmra.mxu0 %v1313_v26  ;;  %v548_v34 = vadd.f32 %v547_v32, %v458_v27  ;;  %v2023_v26 = vpop.permute.xlu0 %815 }
  0xc0   :  { %586 = vmatmul.bf16.gmra.mxu1 %v1317_v28  ;;  %1105 = vmatmul.bf16.vlgmr.msra.gmra.mxu2 %v1013_v33  ;;  %v915_v36 = vmul.f32 %v766_v31, %v548_v34  ;;  %v2025_v31 = vpop.permute.xlu1 %820 }
  0xc2   :  { %v1985_v35 = vpop.f32.mrf.mxu3  ;;  %v951_v45 = vadd.f32 %v1967_v14, %v915_v36 }
  0xc3   :  { %v460_v37 = vpop.f32.mrf.mxu0 }
  0xc4   :  { %v983_v53 = vmax.f32 %v951_v45, 0.0 }
  0xc5   :  { %v549_v39 = vpop.f32.mrf.mxu1 }
  0xc6   :  { %v550_v40 = vadd.f32 %v549_v39, %v460_v37 }
  0xc8   :  { %v916_v42 = vmul.f32 %v771_v41, %v550_v40  ;;  %v2031_v41 = vpop.permute.xlu2 %825  ;;  %v2035_v45 = vpop.permute.xlu1 %835 }
  0xca   :  { %v2000_v48 = vpop.f32.mrf.mxu3  ;;  %v952_v49 = vadd.f32 %v1967_v14, %v916_v42  ;;  %v2033_v42 = vpop.permute.xlu0 %830 }
  0xcb   :  { %v463_v51 = vpop.f32.mrf.mxu0 }
  0xcc   :  { %v984_v54 = vmax.f32 %v952_v49, 0.0 }
  0xcd   :  { %v552_v55 = vpop.f32.mrf.mxu1 }
  0xce   :  { %v1014_v56 = vpack.c.bf16 %v984_v54, %v983_v53  ;;  %502 = vmatmul.bf16.gmra.mxu0 %v1321_v50  ;;  %v553_v59 = vadd.f32 %v552_v55, %v463_v51 }
  0xd0   :  { %591 = vmatmul.bf16.gmra.mxu1 %v1325_v52  ;;  %1110 = vmatmul.bf16.gmra.mxu2 %v1014_v56  ;;  %v917_v62 = vmul.f32 %v776_v38, %v553_v59  ;;  %v2038_v53 = vpop.permute.xlu2 %840 }
  0xd2   :  { %v2003_v60 = vpop.f32.mrf.mxu3  ;;  %v953_v5 = vadd.f32 %v1967_v14, %v917_v62  ;;  %v876_v54 = vpop.permute.xlu0 %875 }
  0xd3   :  { %v465_v63 = vpop.f32.mrf.mxu0  ;;  %v881_v62 = vpop.permute.xlu1 %880 }
  0xd4   :  { %v985_v17 = vmax.f32 %v953_v5, 0.0 }
  0xd5   :  { %v554_v0 = vpop.f32.mrf.mxu1 }
  0xd6   :  { %v555_v1 = vadd.f32 %v554_v0, %v465_v63 }
  0xd8   :  { %v918_v2 = vmul.f32 %v781_v57, %v555_v1 }
  0xda   :  { %v2018_v10 = vpop.f32.mrf.mxu3  ;;  %v954_v12 = vadd.f32 %v1967_v14, %v918_v2 }
  0xdb   :  { %v468_v15 = vpop.f32.mrf.mxu0 }
  0xdc   :  { %v986_v18 = vmax.f32 %v954_v12, 0.0 }
  0xdd   :  { %v557_v19 = vpop.f32.mrf.mxu1 }
  0xde   :  { %v1015_v21 = vpack.c.bf16 %v986_v18, %v985_v17  ;;  %507 = vmatmul.bf16.gmra.mxu0 %v1329_v13  ;;  %v558_v22 = vadd.f32 %v557_v19, %v468_v15  ;;  %v886_v19 = vpop.permute.xlu1 %885 }
  0xe0   :  { %596 = vmatmul.bf16.gmra.mxu1 %v1333_v16  ;;  %1115 = vmatmul.bf16.gmra.mxu2 %v1015_v21  ;;  %v919_v27 = vmul.f32 %v786_v58, %v558_v22  ;;  %v2048_v21 = vpop.permute.xlu0 %850 }
  0xe2   :  { %v2021_v23 = vpop.f32.mrf.mxu3  ;;  %v955_v33 = vadd.f32 %v1967_v14, %v919_v27 }
  0xe3   :  { %v470_v28 = vpop.f32.mrf.mxu0 }
  0xe4   :  { %v987_v38 = vmax.f32 %v955_v33, 0.0 }
  0xe5   :  { %v559_v29 = vpop.f32.mrf.mxu1 }
  0xe6   :  { %v560_v30 = vadd.f32 %v559_v29, %v470_v28 }
  0xe8   :  { %v920_v32 = vmul.f32 %v791_v61, %v560_v30 }
  0xea   :  { %v2028_v34 = vpop.f32.mrf.mxu3  ;;  %v956_v36 = vadd.f32 %v1967_v14, %v920_v32 }
  0xeb   :  { %v473_v37 = vpop.f32.mrf.mxu0 }
  0xec   :  { %v988_v39 = vmax.f32 %v956_v36, 0.0 }
  0xed   :  { %v562_v40 = vpop.f32.mrf.mxu1 }
  0xee   :  { %v1016_v43 = vpack.c.bf16 %v988_v39, %v987_v38  ;;  %v563_v44 = vadd.f32 %v562_v40, %v473_v37 }
  0xf0   :  { %1120 = vmatmul.bf16.gmra.mxu2 %v1016_v43  ;;  %v921_v47 = vmul.f32 %v796_v6, %v563_v44 }
  0xf2   :  { %v602_v46 = vpop.f32.mrf.mxu3  ;;  %v957_v56 = vadd.f32 %v1967_v14, %v921_v47  ;;  %v2055_v47 = vpop.permute.xlu0 %855 }
  0xf3   :  { %v475_v49 = vpop.f32.mrf.mxu0  ;;  %v603_v50 = vadd.f32 %v602_v46, %v1962_v11 }
  0xf4   :  { %v989_v0 = vmax.f32 %v957_v56, 0.0  ;;  %v2059_v56 = vpop.permute.xlu1 %860 }
  0xf5   :  { %v564_v51 = vpop.f32.mrf.mxu1  ;;  %v937_v57 = vmul.f32 %v876_v54, %v603_v50 }
  0xf6   :  { %v565_v52 = vadd.f32 %v564_v51, %v475_v49 }
  0xf7   :  { %v973_v11 = vadd.f32 %v1967_v14, %v937_v57 }
  0xf8   :  { %v922_v55 = vmul.f32 %v801_v9, %v565_v52  ;;  %v2045_v9 = vpop.permute.xlu2 %845 }
  0xf9   :  { %v1005_v7 = vmax.f32 %v973_v11, 0.0 }
  0xfa   :  { %v604_v58 = vpop.f32.mrf.mxu3  ;;  %v958_v59 = vadd.f32 %v1967_v14, %v922_v55 }
  0xfb   :  { %v605_v61 = vadd.f32 %v604_v58, %v1982_v24  ;;  %v478_v63 = vpop.f32.mrf.mxu0 }
  0xfc   :  { %v990_v1 = vmax.f32 %v958_v59, 0.0 }
  0xfd   :  { %v938_v2 = vmul.f32 %v881_v62, %v605_v61  ;;  %v567_v3 = vpop.f32.mrf.mxu1 }
  0xfe   :  { %v1017_v4 = vpack.c.bf16 %v990_v1, %v989_v0  ;;  %v568_v6 = vadd.f32 %v567_v3, %v478_v63 }
  0xff   :  { %v974_v5 = vadd.f32 %v1967_v14, %v938_v2 }
 0x100   :  { %1125 = vmatmul.bf16.gmra.mxu2 %v1017_v4  ;;  %v923_v24 = vmul.f32 %v806_v20, %v568_v6  ;;  %v891_v33 = vpop.permute.xlu2 %890 }
 0x101   :  { %v1006_v8 = vmax.f32 %v974_v5, 0.0 }
 0x102   :  { %v607_v12 = vpop.f32.mrf.mxu3  ;;  %v959_v27 = vadd.f32 %v1967_v14, %v923_v24 }
 0x103   :  { %v1025_v13 = vpack.c.bf16 %v1006_v8, %v1005_v7  ;;  %v480_v15 = vpop.f32.mrf.mxu0  ;;  %v608_v16 = vadd.f32 %v607_v12, %v1985_v35  ;;  %v2067_v12 = vpop.permute.xlu1 %865 }
 0x104   :  { %v991_v36 = vmax.f32 %v959_v27, 0.0 }
 0x105   :  { %v569_v17 = vpop.f32.mrf.mxu1  ;;  %1165 = vmatmul.bf16.vlgmr.msra.gmra.mxu3 %v1025_v13  ;;  %v939_v28 = vmul.f32 %v886_v19, %v608_v16 }
 0x106   :  { %v570_v18 = vadd.f32 %v569_v17, %v480_v15 }
 0x107   :  { %v975_v39 = vadd.f32 %v1967_v14, %v939_v28 }
 0x108   :  { %v924_v22 = vmul.f32 %v811_v25, %v570_v18  ;;  %v896_v57 = vpop.permute.xlu2 %895 }
 0x109   :  { %v1007_v44 = vmax.f32 %v975_v39, 0.0 }
 0x10a   :  { %v609_v29 = vpop.f32.mrf.mxu3  ;;  %v960_v30 = vadd.f32 %v1967_v14, %v924_v22 }
 0x10b   :  { %v610_v32 = vadd.f32 %v609_v29, %v2000_v48  ;;  %v483_v20 = vpop.f32.mrf.mxu0 }
 0x10c   :  { %v992_v37 = vmax.f32 %v960_v30, 0.0 }
 0x10d   :  { %v940_v35 = vmul.f32 %v891_v33, %v610_v32  ;;  %v572_v38 = vpop.f32.mrf.mxu1  ;;  %v911_v33 = vpop.permute.xlu1 %910 }
 0x10e   :  { %v1018_v40 = vpack.c.bf16 %v992_v37, %v991_v36  ;;  %v573_v25 = vadd.f32 %v572_v38, %v483_v20 }
 0x10f   :  { %v976_v43 = vadd.f32 %v1967_v14, %v940_v35 }
 0x110   :  { %1130 = vmatmul.bf16.gmra.mxu2 %v1018_v40  ;;  %v925_v48 = vmul.f32 %v2023_v26, %v573_v25  ;;  %v901_v26 = vpop.permute.xlu0 %900 }
 0x111   :  { %v1008_v46 = vmax.f32 %v976_v43, 0.0 }
 0x112   :  { %v612_v49 = vpop.f32.mrf.mxu3  ;;  %v961_v59 = vadd.f32 %v1967_v14, %v925_v48 }
 0x113   :  { %v1026_v50 = vpack.c.bf16 %v1008_v46, %v1007_v44  ;;  %v485_v51 = vpop.f32.mrf.mxu0  ;;  %v613_v52 = vadd.f32 %v612_v49, %v2003_v60 }
 0x114   :  { %v993_v11 = vmax.f32 %v961_v59, 0.0 }
 0x115   :  { %v574_v54 = vpop.f32.mrf.mxu1  ;;  %1170 = vmatmul.bf16.gmra.mxu3 %v1026_v50  ;;  %v941_v61 = vmul.f32 %v896_v57, %v613_v52 }
 0x116   :  { %v575_v55 = vadd.f32 %v574_v54, %v485_v51 }
 0x117   :  { %v977_v4 = vadd.f32 %v1967_v14, %v941_v61 }
 0x118   :  { %v926_v58 = vmul.f32 %v2025_v31, %v575_v55  ;;  %v906_v19 = vpop.permute.xlu0 %905 }
 0x119   :  { %v1009_v7 = vmax.f32 %v977_v4, 0.0 }
 0x11a   :  { %v614_v62 = vpop.f32.mrf.mxu3  ;;  %v962_v63 = vadd.f32 %v1967_v14, %v926_v58 }
 0x11b   :  { %v615_v0 = vadd.f32 %v614_v62, %v2018_v10  ;;  %v488_v1 = vpop.f32.mrf.mxu0 }
 0x11c   :  { %v994_v60 = vmax.f32 %v962_v63, 0.0 }
 0x11d   :  { %v942_v2 = vmul.f32 %v901_v26, %v615_v0  ;;  %v577_v3 = vpop.f32.mrf.mxu1 }
 0x11e   :  { %v1019_v5 = vpack.c.bf16 %v994_v60, %v993_v11  ;;  %v578_v31 = vadd.f32 %v577_v3, %v488_v1 }
 0x11f   :  { %v978_v6 = vadd.f32 %v1967_v14, %v942_v2 }
 0x120   :  { %1135 = vmatmul.bf16.gmra.mxu2 %v1019_v5  ;;  %v927_v10 = vmul.f32 %v2031_v41, %v578_v31 }
 0x121   :  { %v1010_v8 = vmax.f32 %v978_v6, 0.0 }
 0x122   :  { %v617_v13 = vpop.f32.mrf.mxu3  ;;  %v963_v27 = vadd.f32 %v1967_v14, %v927_v10 }
 0x123   :  { %v1027_v24 = vpack.c.bf16 %v1010_v8, %v1009_v7  ;;  %v490_v15 = vpop.f32.mrf.mxu0  ;;  %v618_v16 = vadd.f32 %v617_v13, %v2021_v23 }
 0x124   :  { %v995_v41 = vmax.f32 %v963_v27, 0.0 }
 0x125   :  { %v579_v17 = vpop.f32.mrf.mxu1  ;;  %1175 = vmatmul.bf16.gmra.mxu3 %v1027_v24  ;;  %v943_v28 = vmul.f32 %v906_v19, %v618_v16 }
 0x126   :  { %v580_v18 = vadd.f32 %v579_v17, %v490_v15 }
 0x127   :  { %v979_v35 = vadd.f32 %v1967_v14, %v943_v28 }
 0x128   :  { %v928_v22 = vmul.f32 %v2033_v42, %v580_v18 }
 0x129   :  { %v1011_v40 = vmax.f32 %v979_v35, 0.0 }
 0x12a   :  { %v619_v29 = vpop.f32.mrf.mxu3  ;;  %v964_v30 = vadd.f32 %v1967_v14, %v928_v22 }
 0x12b   :  { %v620_v32 = vadd.f32 %v619_v29, %v2028_v34  ;;  %v493_v20 = vpop.f32.mrf.mxu0 }
 0x12c   :  { %v996_v36 = vmax.f32 %v964_v30, 0.0 }
 0x12d   :  { %v944_v37 = vmul.f32 %v911_v33, %v620_v32  ;;  %v582_v23 = vpop.f32.mrf.mxu1 }
 0x12e   :  { %v1020_v38 = vpack.c.bf16 %v996_v36, %v995_v41  ;;  %v583_v42 = vadd.f32 %v582_v23, %v493_v20  ;;  %v871_v23 = vpop.permute.xlu2 %870 }
 0x12f   :  { %v980_v39 = vadd.f32 %v1967_v14, %v944_v37 }
 0x130   :  { %1140 = vmatmul.bf16.gmra.mxu2 %v1020_v38  ;;  %v929_v44 = vmul.f32 %v2035_v45, %v583_v42  ;;  %v2084_v45 = vld [vmem:[%s2137_s5] ss:$0 sm:$0xff]  ;;  %s1638_s5 = smov [#allocation8]  }
 0x131   :  { %v1012_v43 = vmax.f32 %v980_v39, 0.0  ;;  %s1222_s16 = sshll.u32 %s1638_s5, 4  ;;  %s1223_s16 = int_to_ptr.vmem [resolvable:$true] %s1222_s16 }
 0x132   :  { %v965_v48 = vadd.f32 %v1967_v14, %v929_v44 }
 0x133   :  { %v1028_v25 = vpack.c.bf16 %v1012_v43, %v1011_v40  ;;  %v495_v46 = vpop.f32.mrf.mxu0 }
 0x134   :  { %v997_v54 = vmax.f32 %v965_v48, 0.0 }
 0x135   :  { %v584_v34 = vpop.f32.mrf.mxu1  ;;  %1180 = vmatmul.bf16.gmra.mxu3 %v1028_v25 }
 0x136   :  { %v585_v49 = vadd.f32 %v584_v34, %v495_v46 }
 0x138   :  { %v930_v50 = vmul.f32 %v2038_v53, %v585_v49 }
 0x13a   :  { %v966_v51 = vadd.f32 %v1967_v14, %v930_v50 }
 0x13b   :  { %v498_v52 = vpop.f32.mrf.mxu0 }
 0x13c   :  { %v998_v55 = vmax.f32 %v966_v51, 0.0 }
 0x13d   :  { %v587_v57 = vpop.f32.mrf.mxu1 }
 0x13e   :  { %v1021_v58 = vpack.c.bf16 %v998_v55, %v997_v54  ;;  %v588_v59 = vadd.f32 %v587_v57, %v498_v52 }
 0x140   :  { %1145 = vmatmul.bf16.gmra.mxu2 %v1021_v58  ;;  %v931_v62 = vmul.f32 %v2045_v9, %v588_v59 }
 0x142   :  { %v967_v11 = vadd.f32 %v1967_v14, %v931_v62 }
 0x143   :  { %v1106_v61 = vpop.f32.mrf.mxu2  ;;  %v500_v63 = vpop.f32.mrf.mxu0 }
 0x144   :  { %v1107_v53 = vadd.f32 %v2084_v45, %v1106_v61  ;;  %v999_v5 = vmax.f32 %v967_v11, 0.0 }
 0x145   :  { %v589_v0 = vpop.f32.mrf.mxu1 }
 0x146   :  { %1186 = vst [vmem:[#allocation8] sm:$0xff] %v1107_v53  ;;  %v590_v26 = vadd.f32 %v589_v0, %v500_v63 }
 0x148   :  { %v932_v1 = vmul.f32 %v2048_v21, %v590_v26 }
 0x14a   :  { %v968_v60 = vadd.f32 %v1967_v14, %v932_v1 }
 0x14b   :  { %v1108_v2 = vpop.f32.mrf.mxu2  ;;  %v503_v4 = vpop.f32.mrf.mxu0 }
 0x14c   :  { %v1109_v3 = vadd.f32 %v2084_v45, %v1108_v2  ;;  %v1000_v6 = vmax.f32 %v968_v60, 0.0 }
 0x14d   :  { %v592_v31 = vpop.f32.mrf.mxu1 }
 0x14e   :  { %1187 = vst [vmem:[#allocation8 + $0x8] sm:$0xff] %v1109_v3  ;;  %v1022_v9 = vpack.c.bf16 %v1000_v6, %v999_v5  ;;  %v593_v7 = vadd.f32 %v592_v31, %v503_v4 }
 0x150   :  { %1150 = vmatmul.bf16.gmra.mxu2 %v1022_v9  ;;  %v933_v13 = vmul.f32 %v2055_v47, %v593_v7 }
 0x152   :  { %v969_v17 = vadd.f32 %v1967_v14, %v933_v13 }
 0x153   :  { %v1111_v8 = vpop.f32.mrf.mxu2  ;;  %v505_v24 = vpop.f32.mrf.mxu0 }
 0x154   :  { %v1112_v21 = vadd.f32 %v2084_v45, %v1111_v8  ;;  %v1001_v28 = vmax.f32 %v969_v17, 0.0 }
 0x155   :  { %v594_v10 = vpop.f32.mrf.mxu1 }
 0x156   :  { %1188 = vst [vmem:[#allocation8 + $0x10] sm:$0xff] %v1112_v21  ;;  %v595_v15 = vadd.f32 %v594_v10, %v505_v24 }
 0x158   :  { %v934_v16 = vmul.f32 %v2059_v56, %v595_v15 }
 0x15a   :  { %v970_v18 = vadd.f32 %v1967_v14, %v934_v16 }
 0x15b   :  { %v1113_v19 = vpop.f32.mrf.mxu2  ;;  %v508_v27 = vpop.f32.mrf.mxu0 }
 0x15c   :  { %v1114_v22 = vadd.f32 %v2084_v45, %v1113_v19  ;;  %v1002_v29 = vmax.f32 %v970_v18, 0.0 }
 0x15d   :  { %v597_v30 = vpop.f32.mrf.mxu1 }
 0x15e   :  { %1189 = vst [vmem:[#allocation8 + $0x18] sm:$0xff] %v1114_v22  ;;  %v1023_v47 = vpack.c.bf16 %v1002_v29, %v1001_v28  ;;  %v598_v32 = vadd.f32 %v597_v30, %v508_v27 }
 0x160   :  { %1155 = vmatmul.bf16.gmra.mxu2 %v1023_v47  ;;  %v935_v20 = vmul.f32 %v2067_v12, %v598_v32 }
 0x162   :  { %v971_v38 = vadd.f32 %v1967_v14, %v935_v20 }
 0x163   :  { %v1116_v33 = vpop.f32.mrf.mxu2  ;;  %v510_v41 = vpop.f32.mrf.mxu0 }
 0x164   :  { %v1117_v56 = vadd.f32 %v2084_v45, %v1116_v33  ;;  %v1003_v43 = vmax.f32 %v971_v38, 0.0 }
 0x165   :  { %v599_v36 = vpop.f32.mrf.mxu1 }
 0x166   :  { %1190 = vst [vmem:[#allocation8 + $0x20] sm:$0xff] %v1117_v56  ;;  %v600_v37 = vadd.f32 %v599_v36, %v510_v41 }
 0x168   :  { %v936_v35 = vmul.f32 %v871_v23, %v600_v37 }
 0x16a   :  { %v972_v39 = vadd.f32 %v1967_v14, %v936_v35 }
 0x16b   :  { %v1118_v42 = vpop.f32.mrf.mxu2 }
 0x16c   :  { %v1119_v40 = vadd.f32 %v2084_v45, %v1118_v42  ;;  %v1004_v25 = vmax.f32 %v972_v39, 0.0 }
 0x16e   :  { %1191 = vst [vmem:[#allocation8 + $0x28] sm:$0xff] %v1119_v40  ;;  %v1024_v44 = vpack.c.bf16 %v1004_v25, %v1003_v43 }
 0x170   :  { %1160 = vmatmul.bf16.gmra.mxu2 %v1024_v44 }
 0x173   :  { %v1121_v12 = vpop.f32.mrf.mxu2 }
 0x174   :  { %v1122_v46 = vadd.f32 %v2084_v45, %v1121_v12 }
 0x176   :  { %1192 = vst [vmem:[#allocation8 + $0x30] sm:$0xff] %v1122_v46 }
 0x17b   :  { %v1123_v34 = vpop.f32.mrf.mxu2 }
 0x17c   :  { %v1124_v49 = vadd.f32 %v2084_v45, %v1123_v34 }
 0x17e   :  { %1193 = vst [vmem:[#allocation8 + $0x38] sm:$0xff] %v1124_v49 }
 0x183   :  { %v1126_v50 = vpop.f32.mrf.mxu2 }
 0x184   :  { %v1127_v48 = vadd.f32 %v2084_v45, %v1126_v50 }
 0x186   :  { %1194 = vst [vmem:[#allocation8 + $0x40] sm:$0xff] %v1127_v48 }
 0x188   :  { %v1166_v14 = vpop.f32.mrf.mxu3 }
 0x189   :  { %v1167_v51 = vadd.f32 %v2084_v45, %v1166_v14 }
 0x18b   :  { %1210 = vst [vmem:[#allocation8 + $0xc0] sm:$0xff] %v1167_v51  ;;  %v1128_v52 = vpop.f32.mrf.mxu2 }
 0x18c   :  { %v1129_v54 = vadd.f32 %v2084_v45, %v1128_v52 }
 0x18e   :  { %1195 = vst [vmem:[#allocation8 + $0x48] sm:$0xff] %v1129_v54 }
 0x190   :  { %v1168_v55 = vpop.f32.mrf.mxu3 }
 0x191   :  { %v1169_v57 = vadd.f32 %v2084_v45, %v1168_v55 }
 0x193   :  { %1211 = vst [vmem:[#allocation8 + $0xc8] sm:$0xff] %v1169_v57  ;;  %v1131_v58 = vpop.f32.mrf.mxu2 }
 0x194   :  { %v1132_v59 = vadd.f32 %v2084_v45, %v1131_v58 }
 0x196   :  { %1196 = vst [vmem:[#allocation8 + $0x50] sm:$0xff] %v1132_v59 }
 0x198   :  { %v1171_v61 = vpop.f32.mrf.mxu3 }
 0x199   :  { %v1172_v62 = vadd.f32 %v2084_v45, %v1171_v61 }
 0x19b   :  { %1212 = vst [vmem:[#allocation8 + $0xd0] sm:$0xff] %v1172_v62  ;;  %v1133_v53 = vpop.f32.mrf.mxu2 }
 0x19c   :  { %v1134_v63 = vadd.f32 %v2084_v45, %v1133_v53 }
 0x19e   :  { %1197 = vst [vmem:[#allocation8 + $0x58] sm:$0xff] %v1134_v63 }
 0x1a0   :  { %v1173_v0 = vpop.f32.mrf.mxu3 }
 0x1a1   :  { %v1174_v26 = vadd.f32 %v2084_v45, %v1173_v0 }
 0x1a3   :  { %1213 = vst [vmem:[#allocation8 + $0xd8] sm:$0xff] %v1174_v26  ;;  %v1136_v1 = vpop.f32.mrf.mxu2 }
 0x1a4   :  { %v1137_v11 = vadd.f32 %v2084_v45, %v1136_v1 }
 0x1a6   :  { %1198 = vst [vmem:[#allocation8 + $0x60] sm:$0xff] %v1137_v11 }
 0x1a8   :  { %v1176_v60 = vpop.f32.mrf.mxu3 }
 0x1a9   :  { %v1177_v2 = vadd.f32 %v2084_v45, %v1176_v60 }
 0x1ab   :  { %1214 = vst [vmem:[#allocation8 + $0xe0] sm:$0xff] %v1177_v2  ;;  %v1138_v3 = vpop.f32.mrf.mxu2 }
 0x1ac   :  { %v1139_v4 = vadd.f32 %v2084_v45, %v1138_v3 }
 0x1ae   :  { %1199 = vst [vmem:[#allocation8 + $0x68] sm:$0xff] %v1139_v4 }
 0x1b0   :  { %v1178_v5 = vpop.f32.mrf.mxu3 }
 0x1b1   :  { %v1179_v6 = vadd.f32 %v2084_v45, %v1178_v5 }
 0x1b3   :  { %1215 = vst [vmem:[#allocation8 + $0xe8] sm:$0xff] %v1179_v6  ;;  %v1141_v31 = vpop.f32.mrf.mxu2 }
 0x1b4   :  { %v1142_v9 = vadd.f32 %v2084_v45, %v1141_v31 }
 0x1b6   :  { %1200 = vst [vmem:[#allocation8 + $0x70] sm:$0xff] %v1142_v9 }
 0x1b8   :  { %v1181_v7 = vpop.f32.mrf.mxu3 }
 0x1b9   :  { %v1182_v8 = vadd.f32 %v2084_v45, %v1181_v7 }
 0x1bb   :  { %1216 = vst [vmem:[#allocation8 + $0xf0] sm:$0xff] %v1182_v8  ;;  %v1143_v13 = vpop.f32.mrf.mxu2 }
 0x1bc   :  { %v1144_v21 = vadd.f32 %v2084_v45, %v1143_v13 }
 0x1be   :  { %1201 = vst [vmem:[#allocation8 + $0x78] sm:$0xff] %v1144_v21 }
 0x1c0   :  { %v1183_v24 = vpop.f32.mrf.mxu3 }
 0x1c1   :  { %v1184_v10 = vadd.f32 %v2084_v45, %v1183_v24 }
 0x1c3   :  { %1217 = vst [vmem:[#allocation8 + $0xf8] sm:$0xff] %v1184_v10  ;;  %v1146_v15 = vpop.f32.mrf.mxu2 }
 0x1c4   :  { %v1147_v16 = vadd.f32 %v2084_v45, %v1146_v15 }
 0x1c6   :  { %1202 = vst [vmem:[#allocation8 + $0x80] sm:$0xff] %v1147_v16 }
 0x1cb   :  { %v1148_v17 = vpop.f32.mrf.mxu2 }
 0x1cc   :  { %v1149_v18 = vadd.f32 %v2084_v45, %v1148_v17 }
 0x1ce   :  { %1203 = vst [vmem:[#allocation8 + $0x88] sm:$0xff] %v1149_v18 }
 0x1d3   :  { %v1151_v19 = vpop.f32.mrf.mxu2 }
 0x1d4   :  { %v1152_v22 = vadd.f32 %v2084_v45, %v1151_v19 }
 0x1d6   :  { %1204 = vst [vmem:[#allocation8 + $0x90] sm:$0xff] %v1152_v22 }
 0x1db   :  { %v1153_v27 = vpop.f32.mrf.mxu2 }
 0x1dc   :  { %v1154_v28 = vadd.f32 %v2084_v45, %v1153_v27 }
 0x1de   :  { %1205 = vst [vmem:[#allocation8 + $0x98] sm:$0xff] %v1154_v28 }
 0x1e3   :  { %v1156_v29 = vpop.f32.mrf.mxu2 }
 0x1e4   :  { %v1157_v30 = vadd.f32 %v2084_v45, %v1156_v29 }
 0x1e6   :  { %1206 = vst [vmem:[#allocation8 + $0xa0] sm:$0xff] %v1157_v30 }
 0x1eb   :  { %v1158_v47 = vpop.f32.mrf.mxu2 }
 0x1ec   :  { %v1159_v32 = vadd.f32 %v2084_v45, %v1158_v47 }
 0x1ee   :  { %1207 = vst [vmem:[#allocation8 + $0xa8] sm:$0xff] %v1159_v32 }
 0x1f3   :  { %v1161_v33 = vpop.f32.mrf.mxu2 }
 0x1f4   :  { %v1162_v20 = vadd.f32 %v2084_v45, %v1161_v33 }
 0x1f6   :  { %1208 = vst [vmem:[#allocation8 + $0xb0] sm:$0xff] %v1162_v20 }
 0x1fb   :  { %v1163_v56 = vpop.f32.mrf.mxu2 }
 0x1fc   :  { %v1164_v41 = vadd.f32 %v2084_v45, %v1163_v56 }
 0x1fe   :  { %1209 = vst [vmem:[#allocation8 + $0xb8] sm:$0xff] %v1164_v41 }
 0x1ff   :  { %1230 = dma.vmem_to_hbm [thread:$0]  %s1223_s16, 4096, %s1225_s19, [#allocation5], %s1639_s20, %s1639_s20, %s1640_s2  }
 0x200   :  { %1631 = dma.done.wait [#allocation5], 4096  }
 0x201   :  { %1632 = vsyncadd [#allocation5], 4294963200 }
 0x202   :  { %1235 = vsyncpa [#allocation4], 1 }
 0x203   :  { %1236 = vsyncpa [#allocation7], 1 }
 0x204   :  { %1237 = vsyncpa [#allocation5], 1 }

</bundles_post_ra>
